<compile_context>
chip_gen: v7x
topology: tpu7x:2x2x1
jax: 0.10.0
libtpu: 0.0.40
codegen_flags: <defaults>
</compile_context>

<pallas_src>
import jax
import jax.numpy as jnp
from jax.experimental import pallas as pl
from jax.experimental.pallas import tpu as pltpu


def transit_kernel(x_ref, w_ref, scale_ref, shift_ref, bias_ref, o_ref):
    """One (time-tile, batch-block) step: BN(eval)+ReLU on the VPU, 1x1 conv on the MXU."""
    w = w_ref[...]                       # [C_out, C_in], bf16 (or f32) resident block
    scale = scale_ref[...]               # [C_in, 1] f32
    shift = shift_ref[...]               # [C_in, 1] f32
    bias = bias_ref[...]                 # [C_out, 1] f32
    # Static unrolled loop over the batches in this block: each iteration is a
    # clean 2-D MXU matmul (no transpose, no batched-dot XLU shuffles).
    for i in range(x_ref.shape[0]):
        x = x_ref[i].astype(jnp.float32)                     # [C_in, Tt]
        # Folded BatchNorm1d (eval) affine + ReLU, kept in f32 on the VPU.
        y = jnp.maximum(x * scale + shift, jnp.float32(0.0))
        # 1x1 Conv1d == channel matmul; bf16 operands, f32 accumulate.
        out = jax.lax.dot_general(
            w, y.astype(w.dtype),                            # [C_out,C_in] x [C_in,Tt]
            dimension_numbers=(((1,), (0,)), ((), ())),
            preferred_element_type=jnp.float32,
        )
        o_ref[i] = (out + bias).astype(o_ref.dtype)          # [C_out, Tt]


def transit_layer(x, weight, bias, gamma, beta, running_mean, running_var,
                  *, eps=1e-5, block_t=None, block_b=None,
                  out_dtype=None, mxu_dtype=jnp.bfloat16,
                  vmem_budget_bytes=14 << 20):
    """Pallas wrapper for TransitLayer.forward (inference semantics).

    x:      [B, C_in, T]
    weight: [C_out, C_in]   (Conv1d kernel-size-1 weight, squeezed)
    bias:   [C_out] or None
    gamma, beta, running_mean, running_var: [C_in]   (BatchNorm1d eval params)
    """
    B, C_in, T = x.shape
    C_out = weight.shape[0]
    assert weight.shape[1] == C_in
    if out_dtype is None:
        out_dtype = x.dtype

    # ---- Fold BatchNorm1d (eval) into a per-channel affine, ONCE, host-side.
    inv_std = jax.lax.rsqrt(running_var.astype(jnp.float32) + jnp.float32(eps))
    scale = (gamma.astype(jnp.float32) * inv_std).reshape(C_in, 1)
    shift = (beta.astype(jnp.float32)
             - running_mean.astype(jnp.float32) * gamma.astype(jnp.float32) * inv_std
             ).reshape(C_in, 1)
    if bias is None:
        bias_col = jnp.zeros((C_out, 1), jnp.float32)
    else:
        bias_col = bias.astype(jnp.float32).reshape(C_out, 1)
    # Resident MXU operand: bf16 halves its VMEM footprint and uses the
    # bf16-native MXU path (v6e/v7x); accumulation stays f32 in the kernel.
    w_mxu = weight.astype(mxu_dtype)

    # ---- Tile selection: big lane-dense time tiles, several batches per step.
    if block_t is None:
        block_t = T if T <= 2048 else 1024
    block_t = min(block_t, T)
    if block_t != T:
        block_t = max(128, (block_t // 128) * 128)   # lane-dense when not full-T
    if block_b is None:
        block_b = B if B <= 8 else 1
    block_b = max(1, min(block_b, B))

    x_bytes = jnp.dtype(x.dtype).itemsize
    o_bytes = jnp.dtype(out_dtype).itemsize
    w_bytes = jnp.dtype(mxu_dtype).itemsize

    def _tile_bytes(bb, bt):
        # double-buffered x/out tiles + (double-buffered) resident weight + vectors
        return (2 * bb * C_in * bt * x_bytes
                + 2 * bb * C_out * bt * o_bytes
                + 2 * C_out * C_in * w_bytes
                + 8 * (2 * C_in + C_out) * 4)

    while block_b > 1 and _tile_bytes(block_b, block_t) > vmem_budget_bytes:
        block_b = (block_b + 1) // 2
    while block_t > 512 and _tile_bytes(block_b, block_t) > vmem_budget_bytes:
        bt2 = ((block_t // 2) // 128) * 128
        if bt2 < 128:
            break
        block_t = bt2

    nt = pl.cdiv(T, block_t)
    nb = pl.cdiv(B, block_b)
    # Lead with the time-tile axis so v7x's two TensorCores both get work even
    # when B == 1; both axes are "parallel" (no cross-step dependence).
    grid = (nt, nb)

    cost = pl.CostEstimate(
        flops=2 * B * C_out * C_in * T + 3 * B * C_in * T,
        transcendentals=0,
        bytes_accessed=(B * C_in * T * x_bytes
                        + C_out * C_in * w_bytes
                        + B * C_out * T * o_bytes),
    )

    out = pl.pallas_call(
        transit_kernel,
        out_shape=jax.ShapeDtypeStruct((B, C_out, T), out_dtype),
        grid=grid,
        in_specs=[
            pl.BlockSpec((block_b, C_in, block_t), lambda t, b: (b, 0, t)),  # x tile
            pl.BlockSpec((C_out, C_in), lambda t, b: (0, 0)),                # weight (resident)
            pl.BlockSpec((C_in, 1), lambda t, b: (0, 0)),                    # BN scale
            pl.BlockSpec((C_in, 1), lambda t, b: (0, 0)),                    # BN shift
            pl.BlockSpec((C_out, 1), lambda t, b: (0, 0)),                   # conv bias
        ],
        out_specs=pl.BlockSpec((block_b, C_out, block_t), lambda t, b: (b, 0, t)),
        compiler_params=pltpu.CompilerParams(
            dimension_semantics=("parallel", "parallel")),
        cost_estimate=cost,
    )(x, w_mxu, scale, shift, bias_col)

    return out


def reference_transit(x, weight, bias, gamma, beta, mean, var, eps=1e-5):
    """Pure-JAX reference of the PyTorch forward (eval mode, f32)."""
    xn = (x - mean[None, :, None]) * jax.lax.rsqrt(var[None, :, None] + eps)
    xn = xn * gamma[None, :, None] + beta[None, :, None]
    xn = jnp.maximum(xn, 0.0)
    out = jnp.einsum("oc,bct->bot", weight, xn,
                     precision=jax.lax.Precision.HIGHEST)
    if bias is not None:
        out = out + bias[None, :, None]
    return out


if __name__ == "__main__":
    # Small shapes consistent with a CAMPPlus TransitLayer:
    # [B, C_in, T] feature maps, 1x1 conv C_in -> C_out.
    B, C_in, C_out, T = 2, 64, 32, 512

    key = jax.random.PRNGKey(0)
    ks = jax.random.split(key, 7)

    x = jax.random.normal(ks[0], (B, C_in, T), dtype=jnp.float32)
    weight = jax.random.normal(ks[1], (C_out, C_in), dtype=jnp.float32) * (C_in ** -0.5)
    bias = 0.1 * jax.random.normal(ks[2], (C_out,), dtype=jnp.float32)
    gamma = 1.0 + 0.1 * jax.random.normal(ks[3], (C_in,), dtype=jnp.float32)
    beta = 0.1 * jax.random.normal(ks[4], (C_in,), dtype=jnp.float32)
    running_mean = 0.1 * jax.random.normal(ks[5], (C_in,), dtype=jnp.float32)
    running_var = jnp.abs(jax.random.normal(ks[6], (C_in,), dtype=jnp.float32)) + 0.5

    out = transit_layer(x, weight, bias, gamma, beta, running_mean, running_var)
    out = jax.block_until_ready(out)

    ref = reference_transit(x, weight, bias, gamma, beta, running_mean, running_var)
    assert out.shape == (B, C_out, T)
    # bf16 MXU operands -> ~1e-3 relative error vs the f32 reference.
    assert jnp.allclose(out.astype(jnp.float32), ref, atol=2e-2, rtol=2e-2), (
        "Pallas TransitLayer kernel mismatch vs reference"
    )

    print("KERNEL_OK")
</pallas_src>

<mosaic_0001>
module attributes {stable_mosaic.version = 11 : i64} {
  func.func @transit_kernel(%arg0: i32, %arg1: i32, %arg2: memref<2x64x512xf32, #tpu.memory_space<vmem>>, %arg3: memref<32x64xbf16, #tpu.memory_space<vmem>>, %arg4: memref<64x1xf32, #tpu.memory_space<vmem>>, %arg5: memref<64x1xf32, #tpu.memory_space<vmem>>, %arg6: memref<32x1xf32, #tpu.memory_space<vmem>>, %arg7: memref<2x32x512xf32, #tpu.memory_space<vmem>>) attributes {dimension_semantics = [#tpu.dimension_semantics<parallel>, #tpu.dimension_semantics<parallel>], iteration_bounds = array<i64: 1, 1>, scalar_prefetch = 0 : i64, scratch_operands = 0 : i64, tpu.core_type = #tpu.core_type<tc>, window_params = [{transform_indices = @transform_0, window_bounds = array<i64: 2, 64, 512>}, {pipeline_mode = #tpu.pipeline_mode<synchronous>, transform_indices = @transform_1, window_bounds = array<i64: 32, 64>}, {pipeline_mode = #tpu.pipeline_mode<synchronous>, transform_indices = @transform_2, window_bounds = array<i64: 64, 1>}, {pipeline_mode = #tpu.pipeline_mode<synchronous>, transform_indices = @transform_3, window_bounds = array<i64: 64, 1>}, {pipeline_mode = #tpu.pipeline_mode<synchronous>, transform_indices = @transform_4, window_bounds = array<i64: 32, 1>}, {transform_indices = @transform_5, window_bounds = array<i64: 2, 32, 512>}]} {
    %c0 = arith.constant 0 : index
    %c0_0 = arith.constant 0 : index
    %0 = vector.load %arg3[%c0, %c0_0] : memref<32x64xbf16, #tpu.memory_space<vmem>>, vector<32x64xbf16>
    %c0_1 = arith.constant 0 : index
    %c0_2 = arith.constant 0 : index
    %1 = vector.load %arg4[%c0_1, %c0_2] : memref<64x1xf32, #tpu.memory_space<vmem>>, vector<64x1xf32>
    %c0_3 = arith.constant 0 : index
    %c0_4 = arith.constant 0 : index
    %2 = vector.load %arg5[%c0_3, %c0_4] : memref<64x1xf32, #tpu.memory_space<vmem>>, vector<64x1xf32>
    %c0_5 = arith.constant 0 : index
    %c0_6 = arith.constant 0 : index
    %3 = vector.load %arg6[%c0_5, %c0_6] : memref<32x1xf32, #tpu.memory_space<vmem>>, vector<32x1xf32>
    %c0_7 = arith.constant 0 : index
    %c0_8 = arith.constant 0 : index
    %c0_9 = arith.constant 0 : index
    %4 = vector.load %arg2[%c0_7, %c0_8, %c0_9] : memref<2x64x512xf32, #tpu.memory_space<vmem>>, vector<1x64x512xf32>
    %5 = vector.shape_cast %4 : vector<1x64x512xf32> to vector<64x512xf32>
    %6 = vector.broadcast %1 : vector<64x1xf32> to vector<64x512xf32>
    %7 = arith.mulf %5, %6 : vector<64x512xf32>
    %8 = vector.broadcast %2 : vector<64x1xf32> to vector<64x512xf32>
    %9 = arith.addf %7, %8 : vector<64x512xf32>
    %cst = arith.constant 0.000000e+00 : f32
    %10 = vector.broadcast %cst : f32 to vector<64x512xf32>
    %11 = arith.maximumf %9, %10 : vector<64x512xf32>
    %12 = arith.truncf %11 : vector<64x512xf32> to vector<64x512xbf16>
    %cst_10 = arith.constant dense<0.000000e+00> : vector<32x512xf32>
    %13 = tpu.matmul %0, %12, %cst_10 {dimension_numbers = #tpu.dot_dimension_numbers<[1], [0], [0], [1], [0, 0, 1, 1], [], []>} : vector<32x64xbf16>, vector<64x512xbf16>, vector<32x512xf32> -> vector<32x512xf32>
    %14 = vector.broadcast %3 : vector<32x1xf32> to vector<32x512xf32>
    %15 = arith.addf %13, %14 : vector<32x512xf32>
    %c0_11 = arith.constant 0 : index
    %c0_12 = arith.constant 0 : index
    %c0_13 = arith.constant 0 : index
    %16 = vector.load %arg7[%c0_11, %c0_12, %c0_13] : memref<2x32x512xf32, #tpu.memory_space<vmem>>, vector<1x32x512xf32>
    %17 = vector.shape_cast %16 : vector<1x32x512xf32> to vector<32x512xf32>
    %18 = vector.shape_cast %15 : vector<32x512xf32> to vector<1x32x512xf32>
    tpu.vector_store %arg7[%c0_11, %c0_12, %c0_13], %18 {strides = array<i32>} : memref<2x32x512xf32, #tpu.memory_space<vmem>>, vector<1x32x512xf32>,
    %c1 = arith.constant 1 : index
    %c0_14 = arith.constant 0 : index
    %c0_15 = arith.constant 0 : index
    %19 = vector.load %arg2[%c1, %c0_14, %c0_15] : memref<2x64x512xf32, #tpu.memory_space<vmem>>, vector<1x64x512xf32>
    %20 = vector.shape_cast %19 : vector<1x64x512xf32> to vector<64x512xf32>
    %21 = vector.broadcast %1 : vector<64x1xf32> to vector<64x512xf32>
    %22 = arith.mulf %20, %21 : vector<64x512xf32>
    %23 = vector.broadcast %2 : vector<64x1xf32> to vector<64x512xf32>
    %24 = arith.addf %22, %23 : vector<64x512xf32>
    %cst_16 = arith.constant 0.000000e+00 : f32
    %25 = vector.broadcast %cst_16 : f32 to vector<64x512xf32>
    %26 = arith.maximumf %24, %25 : vector<64x512xf32>
    %27 = arith.truncf %26 : vector<64x512xf32> to vector<64x512xbf16>
    %cst_17 = arith.constant dense<0.000000e+00> : vector<32x512xf32>
    %28 = tpu.matmul %0, %27, %cst_17 {dimension_numbers = #tpu.dot_dimension_numbers<[1], [0], [0], [1], [0, 0, 1, 1], [], []>} : vector<32x64xbf16>, vector<64x512xbf16>, vector<32x512xf32> -> vector<32x512xf32>
    %29 = vector.broadcast %3 : vector<32x1xf32> to vector<32x512xf32>
    %30 = arith.addf %28, %29 : vector<32x512xf32>
    %c1_18 = arith.constant 1 : index
    %c0_19 = arith.constant 0 : index
    %c0_20 = arith.constant 0 : index
    %31 = vector.load %arg7[%c1_18, %c0_19, %c0_20] : memref<2x32x512xf32, #tpu.memory_space<vmem>>, vector<1x32x512xf32>
    %32 = vector.shape_cast %31 : vector<1x32x512xf32> to vector<32x512xf32>
    %33 = vector.shape_cast %30 : vector<32x512xf32> to vector<1x32x512xf32>
    tpu.vector_store %arg7[%c1_18, %c0_19, %c0_20], %33 {strides = array<i32>} : memref<2x32x512xf32, #tpu.memory_space<vmem>>, vector<1x32x512xf32>,
    return
  }
  func.func @transform_0(%arg0: i32, %arg1: i32) -> (i32, i32, i32) {
    %c0_i32 = arith.constant 0 : i32
    %c0_i32_0 = arith.constant 0 : i32
    return %arg1, %c0_i32, %arg0 : i32, i32, i32
  }
  func.func @transform_1(%arg0: i32, %arg1: i32) -> (i32, i32) {
    %c0_i32 = arith.constant 0 : i32
    %c0_i32_0 = arith.constant 0 : i32
    %c0_i32_1 = arith.constant 0 : i32
    return %c0_i32, %c0_i32_0 : i32, i32
  }
  func.func @transform_2(%arg0: i32, %arg1: i32) -> (i32, i32) {
    %c0_i32 = arith.constant 0 : i32
    %c0_i32_0 = arith.constant 0 : i32
    %c0_i32_1 = arith.constant 0 : i32
    return %c0_i32, %c0_i32_0 : i32, i32
  }
  func.func @transform_3(%arg0: i32, %arg1: i32) -> (i32, i32) {
    %c0_i32 = arith.constant 0 : i32
    %c0_i32_0 = arith.constant 0 : i32
    %c0_i32_1 = arith.constant 0 : i32
    return %c0_i32, %c0_i32_0 : i32, i32
  }
  func.func @transform_4(%arg0: i32, %arg1: i32) -> (i32, i32) {
    %c0_i32 = arith.constant 0 : i32
    %c0_i32_0 = arith.constant 0 : i32
    %c0_i32_1 = arith.constant 0 : i32
    return %c0_i32, %c0_i32_0 : i32, i32
  }
  func.func @transform_5(%arg0: i32, %arg1: i32) -> (i32, i32, i32) {
    %c0_i32 = arith.constant 0 : i32
    %c0_i32_0 = arith.constant 0 : i32
    return %arg1, %c0_i32, %arg0 : i32, i32, i32
  }
}

</mosaic_0001>

<bundles_post_ra>
// kernel: tpu_custom_call.1
= control target key start
LH: loop header
LB: loop body
LE: loop exit
PB: predicated region body
PF: predicated region fallthrough
CT: control target
= control target key end

     0   :  { %10 = vsyncpa [#allocation3], 0  ;;  %s1159_s0 = inlined_call_operand.hbm [shape: f32[2,64,512], index: 0, kind: input, shape index: {}]   ;;  %s1160_s1 = inlined_call_operand.vmem [shape: bf16[32,64], index: 1, kind: input, shape index: {}]   ;;  %s1161_s2 = inlined_call_operand.vmem [shape: f32[64,1], index: 2, kind: input, shape index: {}]   ;;  %s1162_s3 = inlined_call_operand.vmem [shape: f32[64,1], index: 3, kind: input, shape index: {}]   ;;  %s1163_s4 = inlined_call_operand.vmem [shape: f32[32,1], index: 4, kind: input, shape index: {}]   ;;  %s1164_s5 = inlined_call_operand.hbm [shape: f32[2,32,512], index: 5, kind: output, shape index: {}]  }
   0x1   :  { %11 = vsyncpa [#allocation4], 0  ;;  %s795_s18 = smov [#allocation2]   ;;  %s747_s22 = scalar_lea.hbm %s1159_s0, 8192 }
   0x2   :  { %s17_s19 = sshll.u32 %s795_s18, 4  ;;  %p748_p0 = scmp.ne.s32.totalorder %s1159_s0, %s747_s22  ;;  %s18_s19 = int_to_ptr.vmem [resolvable:$true] %s17_s19 }
   0x3   :  { %p751_p1 = scmp.lt.u32.totalorder %s747_s22, %s1159_s0 }
   0x5   :  { %p753_p2 = pnand %p751_p1, %p748_p0 }
   0x7   :  { %756 = shalt.err (!%p753_p2)
}
   0x8   :  { %s757_s27 = scalar_lea.vmem %s18_s19, 8192  ;;  %p762_p4 = scmp.lt.s32.totalorder %s18_s19, %s18_s19 }
   0x9   :  { %p758_p3 = scmp.ne.s32.totalorder %s18_s19, %s757_s27  ;;  %p763_p5 = scmp.lt.s32.totalorder %s757_s27, %s757_s27 }
   0xb   :  { %p764_p6 = por %p763_p5, %p762_p4 }
   0xd   :  { %p765_p7 = pnand %p764_p6, %p758_p3 }
   0xf   :  { %768 = shalt.err (!%p765_p7)
}
  0x10   :  { %s796_s28 = smov 512   ;;  %s797_s29 = smov 32  }
  0x11   :  { %23 = dma.hbm_to_vmem [thread:$0]  %s1159_s0, 8192, %s18_s19, [#allocation3], %s796_s28, %s796_s28, %s797_s29  }
  0x12   :  { %791 = dma.done.wait [#allocation3], 8192  }
  0x13   :  { %792 = vsyncadd [#allocation3], 4294959104  ;;  %v798_v0 = vmov 0   ;;  %v48_v1 = vld [vmem:[%s1162_s3] sm:$0xff]  ;;  %v49_v3 = vld [vmem:[%s1162_s3 + $0x8] sm:$0xff]  ;;  %vm314_vm0 = vcmask 523264  }
  0x14   :  { %744 = vset.pattern.permute.xlu1 %v798_v0  ;;  %743 = vset.pattern.permute.xlu0 %v798_v0  ;;  %v40_v2 = vld [vmem:[%s1161_s2] sm:$0xff]  ;;  %v41_v4 = vld [vmem:[%s1161_s2 + $0x8] sm:$0xff]  ;;  %v43_v5 = vld [vmem:[%s1161_s2 + $0x18] sm:$0xff] }
  0x15   :  { %353 = vmatprep.mubr.bf16.mxu0 %v798_v0  ;;  %406 = vmatprep.mubr.bf16.mxu1 %v798_v0  ;;  %v42_v6 = vld [vmem:[%s1161_s2 + $0x10] sm:$0xff]  ;;  %v51_v7 = vld [vmem:[%s1162_s3 + $0x18] sm:$0xff]  ;;  %v45_v9 = vld [vmem:[%s1161_s2 + $0x28] sm:$0xff] }
  0x16   :  { %166 = vperm.xlu1 %744, %v48_v1   ;;  %94 = vperm.xlu0 %743, %v40_v2   ;;  %v50_v8 = vld [vmem:[%s1162_s3 + $0x10] sm:$0xff]  ;;  %v44_v10 = vld [vmem:[%s1161_s2 + $0x20] sm:$0xff]  ;;  %v53_v11 = vld [vmem:[%s1162_s3 + $0x28] sm:$0xff] }
  0x17   :  { %v52_v12 = vld [vmem:[%s1162_s3 + $0x20] sm:$0xff]  ;;  %v47_v13 = vld [vmem:[%s1161_s2 + $0x38] sm:$0xff]  ;;  %v46_v14 = vld [vmem:[%s1161_s2 + $0x30] sm:$0xff] }
  0x18   :  { %v55_v15 = vld [vmem:[%s1162_s3 + $0x38] sm:$0xff]  ;;  %v54_v16 = vld [vmem:[%s1162_s3 + $0x30] sm:$0xff]  ;;  %v57_v17 = vld [vmem:[%s1163_s4 + $0x8] sm:$0xff] }
  0x19   :  { %v56_v18 = vld [vmem:[%s1163_s4] sm:$0xff]  ;;  %v59_v19 = vld [vmem:[%s1163_s4 + $0x18] sm:$0xff]  ;;  %v58_v20 = vld [vmem:[%s1163_s4 + $0x10] sm:$0xff] }
  0x1a   :  { %171 = vperm.xlu1 %744, %v49_v3   ;;  %99 = vperm.xlu0 %743, %v41_v4   ;;  %v61_v21 = vld [vmem:[#allocation2 + $0x8] sm:$0xff]  ;;  %v63_v22 = vld [vmem:[#allocation2 + $0x18] sm:$0xff]  ;;  %v60_v23 = vld [vmem:[#allocation2] sm:$0xff] }
  0x1b   :  { %v62_v24 = vld [vmem:[#allocation2 + $0x10] sm:$0xff]  ;;  %v445_v25 = vld [vmem:[#allocation2 + $0x108] sm:$0xff]  ;;  %v447_v26 = vld [vmem:[#allocation2 + $0x118] sm:$0xff] }
  0x1c   :  { %v444_v27 = vld [vmem:[#allocation2 + $0x100] sm:$0xff]  ;;  %v446_v28 = vld [vmem:[#allocation2 + $0x110] sm:$0xff]  ;;  %v65_v35 = vld [vmem:[#allocation2 + $0x28] sm:$0xff] }
  0x1d   :  { %v67_v36 = vld [vmem:[#allocation2 + $0x38] sm:$0xff]  ;;  %v64_v43 = vld [vmem:[#allocation2 + $0x20] sm:$0xff]  ;;  %v66_v45 = vld [vmem:[#allocation2 + $0x30] sm:$0xff] }
  0x1e   :  { %109 = vperm.xlu1 %744, %v43_v5   ;;  %104 = vperm.xlu0 %743, %v42_v6   ;;  %v449_v53 = vld [vmem:[#allocation2 + $0x128] sm:$0xff]  ;;  %v451_v54 = vld [vmem:[#allocation2 + $0x138] sm:$0xff] }
  0x1f   :  { %v69_v61 = vld [vmem:[#allocation2 + $0x48] sm:$0xff]  ;;  %v71_v4 = vld [vmem:[#allocation2 + $0x58] sm:$0xff] }
  0x20   :  { %v73_v62 = vld [vmem:[#allocation2 + $0x68] sm:$0xff]  ;;  %v75_v5 = vld [vmem:[#allocation2 + $0x78] sm:$0xff] }
  0x22   :  { %181 = vperm.xlu1 %744, %v51_v7   ;;  %176 = vperm.xlu0 %743, %v50_v8  }
  0x26   :  { %119 = vperm.xlu1 %744, %v45_v9   ;;  %114 = vperm.xlu0 %743, %v44_v10   ;;  %v68_v10 = vld [vmem:[#allocation2 + $0x40] sm:$0xff] }
  0x2a   :  { %191 = vperm.xlu1 %744, %v53_v11   ;;  %186 = vperm.xlu0 %743, %v52_v12   ;;  %v72_v11 = vld [vmem:[#allocation2 + $0x60] sm:$0xff] }
  0x2e   :  { %129 = vperm.xlu1 %744, %v47_v13   ;;  %124 = vperm.xlu0 %743, %v46_v14  }
  0x32   :  { %201 = vperm.xlu1 %744, %v55_v15   ;;  %196 = vperm.xlu0 %743, %v54_v16  }
  0x36   :  { %291 = vperm.xlu1 %744, %v57_v17   ;;  %286 = vperm.xlu0 %743, %v56_v18   ;;  %v70_v18 = vld [vmem:[#allocation2 + $0x50] sm:$0xff] }
  0x3a   :  { %301 = vperm.xlu1 %744, %v59_v19   ;;  %296 = vperm.xlu0 %743, %v58_v20   ;;  %v74_v19 = vld [vmem:[#allocation2 + $0x70] sm:$0xff] }
  0x95   :  { %v167_v29 = vpop.permute.xlu1 %166  ;;  %v95_v30 = vpop.permute.xlu0 %94 }
  0x96   :  { %v133_v31 = vmul.f32 %v95_v30, %v61_v21  ;;  %v135_v32 = vmul.f32 %v95_v30, %v63_v22  ;;  %v132_v33 = vmul.f32 %v95_v30, %v60_v23  ;;  %v134_v34 = vmul.f32 %v95_v30, %v62_v24 }
  0x97   :  { %v477_v37 = vmul.f32 %v445_v25, %v95_v30  ;;  %v479_v38 = vmul.f32 %v447_v26, %v95_v30  ;;  %v476_v39 = vmul.f32 %v444_v27, %v95_v30  ;;  %v478_v40 = vmul.f32 %v446_v28, %v95_v30 }
  0x98   :  { %v205_v41 = vadd.f32 %v167_v29, %v133_v31  ;;  %v207_v42 = vadd.f32 %v167_v29, %v135_v32  ;;  %v204_v44 = vadd.f32 %v167_v29, %v132_v33  ;;  %v206_v46 = vadd.f32 %v167_v29, %v134_v34 }
  0x99   :  { %v909_v47 = vpop.permute.xlu1 %171  ;;  %v911_v48 = vpop.permute.xlu0 %99  ;;  %v913_v49 = vadd.f32 %v477_v37, %v167_v29  ;;  %v915_v50 = vadd.f32 %v479_v38, %v167_v29  ;;  %v919_v55 = vadd.f32 %v476_v39, %v167_v29  ;;  %v921_v56 = vadd.f32 %v478_v40, %v167_v29  ;;  %v77_v40 = vld [vmem:[#allocation2 + $0x88] sm:$0xff] }
  0x9a   :  { %v137_v51 = vmul.f32 %v911_v48, %v65_v35  ;;  %v139_v52 = vmul.f32 %v911_v48, %v67_v36  ;;  %v237_v57 = vmax.f32 %v205_v41, 0.0  ;;  %v239_v58 = vmax.f32 %v207_v42, 0.0  ;;  %v81_v41 = vld [vmem:[#allocation2 + $0xa8] sm:$0xff] }
  0x9b   :  { %v136_v59 = vmul.f32 %v911_v48, %v64_v43  ;;  %v138_v60 = vmul.f32 %v911_v48, %v66_v45  ;;  %v236_v2 = vmax.f32 %v204_v44, 0.0  ;;  %v238_v3 = vmax.f32 %v206_v46, 0.0  ;;  %v79_v46 = vld [vmem:[#allocation2 + $0x98] sm:$0xff] }
  0x9c   :  { %v209_v63 = vadd.f32 %v909_v47, %v137_v51  ;;  %v211_v1 = vadd.f32 %v909_v47, %v139_v52  ;;  %v934_v12 = vmul.f32 %v449_v53, %v911_v48  ;;  %v937_v13 = vmul.f32 %v451_v54, %v911_v48  ;;  %v83_v51 = vld [vmem:[#allocation2 + $0xb8] sm:$0xff] }
  0x9d   :  { %v927_v6 = vpop.permute.xlu1 %109  ;;  %v929_v7 = vpop.permute.xlu0 %104  ;;  %v208_v8 = vadd.f32 %v909_v47, %v136_v59  ;;  %v210_v9 = vadd.f32 %v909_v47, %v138_v60  ;;  %v76_v60 = vld [vmem:[#allocation2 + $0x80] sm:$0xff] }
  0x9e   :  { %v241_v14 = vmax.f32 %v209_v63, 0.0  ;;  %v243_v15 = vmax.f32 %v211_v1, 0.0  ;;  %v141_v16 = vmul.f32 %v929_v7, %v69_v61  ;;  %v145_v17 = vmul.f32 %v927_v6, %v73_v62  ;;  %v80_v61 = vld [vmem:[#allocation2 + $0xa0] sm:$0xff]  ;;  %v78_v62 = vld [vmem:[#allocation2 + $0x90] sm:$0xff] }
  0x9f   :  { %v240_v20 = vmax.f32 %v208_v8, 0.0  ;;  %v242_v21 = vmax.f32 %v210_v9, 0.0  ;;  %v143_v22 = vmul.f32 %v929_v7, %v71_v4  ;;  %v147_v23 = vmul.f32 %v927_v6, %v75_v5  ;;  %v82_v4 = vld [vmem:[#allocation2 + $0xb0] sm:$0xff] }
  0xa0   :  { %v269_v24 = vpack.c.bf16 %v241_v14, %v237_v57  ;;  %v271_v25 = vpack.c.bf16 %v243_v15, %v239_v58  ;;  %v140_v26 = vmul.f32 %v929_v7, %v68_v10  ;;  %v144_v27 = vmul.f32 %v927_v6, %v72_v11 }
  0xa1   :  { %v945_v28 = vpop.permute.xlu1 %181  ;;  %v947_v29 = vpop.permute.xlu0 %176  ;;  %v268_v30 = vpack.c.bf16 %v240_v20, %v236_v2  ;;  %v270_v31 = vpack.c.bf16 %v242_v21, %v238_v3  ;;  %v142_v32 = vmul.f32 %v929_v7, %v70_v18  ;;  %v146_v33 = vmul.f32 %v927_v6, %v74_v19 }
  0xa2   :  { %321 = vmatprep.subr.bf16.mxu0 %v269_v24  ;;  %374 = vmatprep.subr.bf16.mxu1 %v271_v25  ;;  %v213_v34 = vadd.f32 %v947_v29, %v141_v16  ;;  %v217_v35 = vadd.f32 %v945_v28, %v145_v17  ;;  %v215_v36 = vadd.f32 %v947_v29, %v143_v22  ;;  %v541_v22 = vmax.f32 %v913_v49, 0.0 }
  0xa3   :  { %322 = vmatpush1.bf16.msra.mxu0 %v268_v30  ;;  %375 = vmatpush1.bf16.msra.mxu1 %v270_v31  ;;  %v219_v37 = vadd.f32 %v945_v28, %v147_v23  ;;  %v212_v38 = vadd.f32 %v947_v29, %v140_v26  ;;  %v216_v39 = vadd.f32 %v945_v28, %v144_v27  ;;  %v540_v49 = vmax.f32 %v919_v55, 0.0 }
  0xa4   :  { %v245_v42 = vmax.f32 %v213_v34, 0.0  ;;  %v249_v43 = vmax.f32 %v217_v35, 0.0  ;;  %v247_v44 = vmax.f32 %v215_v36, 0.0  ;;  %v214_v45 = vadd.f32 %v947_v29, %v142_v32  ;;  %v85_v32 = vld [vmem:[#allocation2 + $0xc8] sm:$0xff]  ;;  %v87_v34 = vld [vmem:[#allocation2 + $0xd8] sm:$0xff] }
  0xa5   :  { %v958_v52 = vpop.permute.xlu1 %119  ;;  %v960_v53 = vpop.permute.xlu0 %114  ;;  %v251_v54 = vmax.f32 %v219_v37, 0.0  ;;  %v244_v57 = vmax.f32 %v212_v38, 0.0  ;;  %v248_v58 = vmax.f32 %v216_v39, 0.0  ;;  %v218_v59 = vadd.f32 %v945_v28, %v146_v33  ;;  %v89_v33 = vld [vmem:[#allocation2 + $0xe8] sm:$0xff]  ;;  %v91_v39 = vld [vmem:[#allocation2 + $0xf8] sm:$0xff] }
  0xa6   :  { %v273_v63 = vpack.c.bf16 %v249_v43, %v245_v42  ;;  %v246_v1 = vmax.f32 %v214_v45, 0.0  ;;  %v149_v2 = vmul.f32 %v960_v53, %v77_v40  ;;  %v153_v3 = vmul.f32 %v958_v52, %v81_v41  ;;  %v84_v40 = vld [vmem:[#allocation2 + $0xc0] sm:$0xff] }
  0xa7   :  { %v275_v5 = vpack.c.bf16 %v251_v54, %v247_v44  ;;  %v272_v8 = vpack.c.bf16 %v248_v58, %v244_v57  ;;  %v250_v9 = vmax.f32 %v218_v59, 0.0  ;;  %v151_v10 = vmul.f32 %v960_v53, %v79_v46  ;;  %v86_v54 = vld [vmem:[#allocation2 + $0xd0] sm:$0xff] }
  0xa8   :  { %323 = vmatprep.subr.bf16.mxu0 %v273_v63  ;;  %v155_v11 = vmul.f32 %v958_v52, %v83_v51  ;;  %v148_v14 = vmul.f32 %v960_v53, %v76_v60  ;;  %v152_v15 = vmul.f32 %v958_v52, %v80_v61  ;;  %v150_v16 = vmul.f32 %v960_v53, %v78_v62  ;;  %v88_v51 = vld [vmem:[#allocation2 + $0xe0] sm:$0xff]  ;;  %v90_v61 = vld [vmem:[#allocation2 + $0xf0] sm:$0xff] }
  0xa9   :  { %376 = vmatprep.subr.bf16.mxu1 %v275_v5  ;;  %v970_v17 = vpop.permute.xlu1 %191  ;;  %324 = vmatpush1.bf16.msra.mxu0 %v272_v8  ;;  %v274_v18 = vpack.c.bf16 %v250_v9, %v246_v1  ;;  %v972_v19 = vpop.permute.xlu0 %186  ;;  %v154_v20 = vmul.f32 %v958_v52, %v82_v4  ;;  %v977_v21 = vadd.f32 %v934_v12, %v909_v47  ;;  %v448_v62 = vld [vmem:[#allocation2 + $0x120] sm:$0xff]  ;;  %v543_v9 = vmax.f32 %v915_v50, 0.0 }
  0xaa   :  { %v221_v23 = vadd.f32 %v972_v19, %v149_v2  ;;  %v225_v24 = vadd.f32 %v970_v17, %v153_v3  ;;  %v223_v25 = vadd.f32 %v972_v19, %v151_v10  ;;  %v227_v26 = vadd.f32 %v970_v17, %v155_v11 }
  0xab   :  { %377 = vmatpush1.bf16.msra.mxu1 %v274_v18  ;;  %v220_v27 = vadd.f32 %v972_v19, %v148_v14  ;;  %v224_v30 = vadd.f32 %v970_v17, %v152_v15  ;;  %v222_v31 = vadd.f32 %v972_v19, %v150_v16  ;;  %v226_v12 = vadd.f32 %v970_v17, %v154_v20 }
  0xac   :  { %v253_v35 = vmax.f32 %v221_v23, 0.0  ;;  %v257_v36 = vmax.f32 %v225_v24, 0.0  ;;  %v255_v37 = vmax.f32 %v223_v25, 0.0  ;;  %v259_v38 = vmax.f32 %v227_v26, 0.0 }
  0xad   :  { %v988_v41 = vpop.permute.xlu1 %129  ;;  %v990_v42 = vpop.permute.xlu0 %124  ;;  %v252_v43 = vmax.f32 %v220_v27, 0.0  ;;  %v256_v44 = vmax.f32 %v224_v30, 0.0  ;;  %v254_v45 = vmax.f32 %v222_v31, 0.0  ;;  %v258_v46 = vmax.f32 %v226_v12, 0.0 }
  0xae   :  { %v277_v57 = vpack.c.bf16 %v257_v36, %v253_v35  ;;  %v279_v58 = vpack.c.bf16 %v259_v38, %v255_v37  ;;  %v157_v59 = vmul.f32 %v990_v42, %v85_v32  ;;  %v161_v60 = vmul.f32 %v988_v41, %v89_v33  ;;  %v450_v32 = vld [vmem:[#allocation2 + $0x130] sm:$0xff]  ;;  %v453_v37 = vld [vmem:[#allocation2 + $0x148] sm:$0xff] }
  0xaf   :  { %v276_v63 = vpack.c.bf16 %v256_v44, %v252_v43  ;;  %v278_v1 = vpack.c.bf16 %v258_v46, %v254_v45  ;;  %v159_v2 = vmul.f32 %v990_v42, %v87_v34  ;;  %v163_v3 = vmul.f32 %v988_v41, %v91_v39  ;;  %v457_v38 = vld [vmem:[#allocation2 + $0x168] sm:$0xff]  ;;  %v455_v45 = vld [vmem:[#allocation2 + $0x158] sm:$0xff] }
  0xb0   :  { %325 = vmatprep.subr.bf16.mxu0 %v277_v57  ;;  %378 = vmatprep.subr.bf16.mxu1 %v279_v58  ;;  %v156_v4 = vmul.f32 %v990_v42, %v84_v40  ;;  %v160_v5 = vmul.f32 %v988_v41, %v88_v51  ;;  %v158_v8 = vmul.f32 %v990_v42, %v86_v54  ;;  %v545_v15 = vmax.f32 %v977_v21, 0.0  ;;  %v459_v46 = vld [vmem:[#allocation2 + $0x178] sm:$0xff] }
  0xb1   :  { %v1000_v10 = vpop.permute.xlu1 %201  ;;  %326 = vmatpush1.bf16.msra.mxu0 %v276_v63  ;;  %379 = vmatpush1.bf16.msra.mxu1 %v278_v1  ;;  %v1002_v11 = vpop.permute.xlu0 %196  ;;  %v162_v14 = vmul.f32 %v988_v41, %v90_v61  ;;  %v515_v16 = vadd.f32 %v937_v13, %v909_v47  ;;  %v480_v18 = vmul.f32 %v448_v62, %v911_v48  ;;  %v1024_v61 = vld [vmem:[%s1160_s1] sm:$0xff]  }
  0xb2   :  { %v229_v20 = vadd.f32 %v1002_v11, %v157_v59  ;;  %v233_v50 = vadd.f32 %v1000_v10, %v161_v60  ;;  %v231_v23 = vadd.f32 %v1002_v11, %v159_v2  ;;  %v235_v24 = vadd.f32 %v1000_v10, %v163_v3  ;;  %v452_v59 = vld [vmem:[#allocation2 + $0x140] sm:$0xff] }
  0xb3   :  { %v228_v25 = vadd.f32 %v1002_v11, %v156_v4  ;;  %v232_v26 = vadd.f32 %v1000_v10, %v160_v5  ;;  %v230_v21 = vadd.f32 %v1002_v11, %v158_v8  ;;  %v234_v27 = vadd.f32 %v1000_v10, %v162_v14  ;;  %v456_v3 = vld [vmem:[#allocation2 + $0x160] sm:$0xff] }
  0xb4   :  { %v261_v13 = vmax.f32 %v229_v20, 0.0  ;;  %v265_v30 = vmax.f32 %v233_v50, 0.0  ;;  %v263_v31 = vmax.f32 %v231_v23, 0.0  ;;  %v267_v12 = vmax.f32 %v235_v24, 0.0  ;;  %v461_v24 = vld [vmem:[#allocation2 + $0x188] sm:$0xff] }
  0xb5   :  { %v260_v33 = vmax.f32 %v228_v25, 0.0  ;;  %v264_v34 = vmax.f32 %v232_v26, 0.0  ;;  %v262_v35 = vmax.f32 %v230_v21, 0.0  ;;  %v266_v36 = vmax.f32 %v234_v27, 0.0  ;;  %v465_v25 = vld [vmem:[#allocation2 + $0x1a8] sm:$0xff] }
  0xb6   :  { %v281_v39 = vpack.c.bf16 %v265_v30, %v261_v13  ;;  %v283_v40 = vpack.c.bf16 %v267_v12, %v263_v31  ;;  %v573_v43 = vpack.c.bf16 %v545_v15, %v541_v22  ;;  %v547_v44 = vmax.f32 %v515_v16, 0.0  ;;  %v463_v30 = vld [vmem:[#allocation2 + $0x198] sm:$0xff] }
  0xb7   :  { %v280_v51 = vpack.c.bf16 %v264_v34, %v260_v33  ;;  %v282_v54 = vpack.c.bf16 %v266_v36, %v262_v35  ;;  %v512_v57 = vadd.f32 %v480_v18, %v909_v47  ;;  %v482_v58 = vmul.f32 %v450_v32, %v911_v48  ;;  %v458_v18 = vld [vmem:[#allocation2 + $0x170] sm:$0xff]  ;;  %v467_v31 = vld [vmem:[#allocation2 + $0x1b8] sm:$0xff]  ;;  %v460_v35 = vld [vmem:[#allocation2 + $0x180] sm:$0xff] }
  0xb8   :  { %327 = vmatprep.subr.bf16.mxu0 %v281_v39  ;;  %380 = vmatprep.subr.bf16.mxu1 %v283_v40  ;;  %v575_v60 = vpack.c.bf16 %v547_v44, %v543_v9  ;;  %v485_v22 = vmul.f32 %v453_v37, %v929_v7  ;;  %v489_v62 = vmul.f32 %v457_v38, %v927_v6  ;;  %v542_v4 = vmax.f32 %v921_v56, 0.0  ;;  %v454_v9 = vld [vmem:[#allocation2 + $0x150] sm:$0xff] }
  0xb9   :  { %328 = vmatpush1.bf16.msra.mxu0 %v280_v51  ;;  %381 = vmatpush1.bf16.msra.mxu1 %v282_v54  ;;  %v544_v63 = vmax.f32 %v512_v57, 0.0  ;;  %v514_v48 = vadd.f32 %v482_v58, %v909_v47  ;;  %v487_v1 = vmul.f32 %v455_v45, %v929_v7  ;;  %v491_v2 = vmul.f32 %v459_v46, %v927_v6  ;;  %v464_v45 = vld [vmem:[#allocation2 + $0x1a0] sm:$0xff]  ;;  %v462_v57 = vld [vmem:[#allocation2 + $0x190] sm:$0xff] }
  0xba   :  { %588 = vmatprep.subr.bf16.mxu0 %v573_v43  ;;  %641 = vmatprep.subr.bf16.mxu1 %v575_v60  ;;  %v517_v55 = vadd.f32 %v485_v22, %v947_v29  ;;  %v521_v5 = vadd.f32 %v489_v62, %v945_v28  ;;  %v484_v8 = vmul.f32 %v452_v59, %v929_v7 }
  0xbb   :  { %v572_v14 = vpack.c.bf16 %v544_v63, %v540_v49  ;;  %v546_v15 = vmax.f32 %v514_v48, 0.0  ;;  %v519_v47 = vadd.f32 %v487_v1, %v947_v29  ;;  %v523_v16 = vadd.f32 %v491_v2, %v945_v28  ;;  %v466_v49 = vld [vmem:[#allocation2 + $0x1b0] sm:$0xff]  ;;  %v469_v1 = vld [vmem:[#allocation2 + $0x1c8] sm:$0xff] }
  0xbc   :  { %730 = vmatmul.mubr.msk.bf16.vlgmr.msra.gmra.mrb[0].mxu0 %vm314_vm0, %v1024_v61  ;;  %732 = vmatmul.mubr.msk.bf16.vlgmr.msra.gmra.mrb[0].mxu1 %vm314_vm0, %v1024_v61  ;;  %v549_v56 = vmax.f32 %v517_v55, 0.0  ;;  %v553_v20 = vmax.f32 %v521_v5, 0.0  ;;  %v488_v50 = vmul.f32 %v456_v3, %v927_v6  ;;  %v516_v23 = vadd.f32 %v484_v8, %v947_v29  ;;  %v473_v2 = vld [vmem:[#allocation2 + $0x1e8] sm:$0xff]  ;;  %v471_v8 = vld [vmem:[#allocation2 + $0x1d8] sm:$0xff] }
  0xbd   :  { %589 = vmatpush1.bf16.msra.mxu0 %v572_v14  ;;  %v574_v26 = vpack.c.bf16 %v546_v15, %v542_v4  ;;  %v551_v21 = vmax.f32 %v519_v47, 0.0  ;;  %v555_v27 = vmax.f32 %v523_v16, 0.0  ;;  %v486_v13 = vmul.f32 %v454_v9, %v929_v7  ;;  %363 = vmatprep.mubr.bf16.mxu0 %v798_v0  ;;  %v475_v9 = vld [vmem:[#allocation2 + $0x1f8] sm:$0xff] }
  0xbe   :  { %v577_v12 = vpack.c.bf16 %v553_v20, %v549_v56  ;;  %v520_v32 = vadd.f32 %v488_v50, %v945_v28  ;;  %v548_v33 = vmax.f32 %v516_v23, 0.0  ;;  %v490_v34 = vmul.f32 %v458_v18, %v927_v6  ;;  %416 = vmatprep.mubr.bf16.mxu1 %v798_v0  ;;  %v1058_v6 = vld [vmem:[%s1160_s1 + $0x8] sm:$0xff]   ;;  %v468_v18 = vld [vmem:[#allocation2 + $0x1c0] sm:$0xff]  ;;  %s799_s1 = smov [#allocation5]  }
  0xbf   :  { %642 = vmatpush1.bf16.msra.mxu1 %v574_v26  ;;  %v579_v36 = vpack.c.bf16 %v555_v27, %v551_v21  ;;  %v518_v37 = vadd.f32 %v486_v13, %v947_v29  ;;  %v493_v38 = vmul.f32 %v461_v24, %v960_v53  ;;  %v497_v7 = vmul.f32 %v465_v25, %v958_v52  ;;  %s716_s23 = sshll.u32 %s799_s1, 4  ;;  %s717_s23 = int_to_ptr.vmem [resolvable:$true] %s716_s23 }
  0xc0   :  { %590 = vmatprep.subr.bf16.mxu0 %v577_v12  ;;  %v552_v39 = vmax.f32 %v520_v32, 0.0  ;;  %v522_v40 = vadd.f32 %v490_v34, %v945_v28  ;;  %v495_v43 = vmul.f32 %v463_v30, %v960_v53  ;;  %v499_v44 = vmul.f32 %v467_v31, %v958_v52  ;;  %v470_v30 = vld [vmem:[#allocation2 + $0x1d0] sm:$0xff]  ;;  %s769_s24 = scalar_lea.vmem %s717_s23, 4096  ;;  %p774_p9 = scmp.lt.s32.totalorder %s717_s23, %s717_s23 }
  0xc1   :  { %643 = vmatprep.subr.bf16.mxu1 %v579_v36  ;;  %v550_v29 = vmax.f32 %v518_v37, 0.0  ;;  %v525_v46 = vadd.f32 %v493_v38, %v972_v19  ;;  %v529_v51 = vadd.f32 %v497_v7, %v970_v17  ;;  %v492_v54 = vmul.f32 %v460_v35, %v960_v53  ;;  %p770_p8 = scmp.ne.s32.totalorder %s717_s23, %s769_s24  ;;  %p775_p10 = scmp.lt.s32.totalorder %s769_s24, %s769_s24 }
  0xc2   :  { %v576_v28 = vpack.c.bf16 %v552_v39, %v548_v33  ;;  %v554_v58 = vmax.f32 %v522_v40, 0.0  ;;  %v527_v59 = vadd.f32 %v495_v43, %v972_v19  ;;  %v531_v60 = vadd.f32 %v499_v44, %v970_v17  ;;  %v474_v33 = vld [vmem:[#allocation2 + $0x1f0] sm:$0xff] }
  0xc3   :  { %v557_v22 = vmax.f32 %v525_v46, 0.0  ;;  %v561_v62 = vmax.f32 %v529_v51, 0.0  ;;  %v496_v63 = vmul.f32 %v464_v45, %v958_v52  ;;  %v524_v48 = vadd.f32 %v492_v54, %v972_v19  ;;  %p776_p11 = por %p775_p10, %p774_p9 }
  0xc4   :  { %591 = vmatpush1.bf16.msra.mxu0 %v576_v28  ;;  %v578_v3 = vpack.c.bf16 %v554_v58, %v550_v29  ;;  %v559_v4 = vmax.f32 %v527_v59, 0.0  ;;  %v563_v55 = vmax.f32 %v531_v60, 0.0  ;;  %733 = vmatmul.mubr.msk.bf16.gmra.mrb[4].mxu1 %vm314_vm0, %v1058_v6  ;;  %v494_v5 = vmul.f32 %v462_v57, %v960_v53 }
  0xc5   :  { %v581_v14 = vpack.c.bf16 %v561_v62, %v557_v22  ;;  %731 = vmatmul.mubr.msk.bf16.gmra.mrb[4].mxu0 %vm314_vm0, %v1058_v6  ;;  %v528_v15 = vadd.f32 %v496_v63, %v970_v17  ;;  %v556_v47 = vmax.f32 %v524_v48, 0.0  ;;  %v498_v16 = vmul.f32 %v466_v49, %v958_v52  ;;  %673 = vmatprep.mubr.bf16.mxu1 %v798_v0  ;;  %v472_v52 = vld [vmem:[#allocation2 + $0x1e0] sm:$0xff]  ;;  %p777_p12 = pnand %p776_p11, %p770_p8 }
  0xc6   :  { %644 = vmatpush1.bf16.msra.mxu1 %v578_v3  ;;  %v583_v56 = vpack.c.bf16 %v563_v55, %v559_v4  ;;  %v526_v20 = vadd.f32 %v494_v5, %v972_v19  ;;  %v501_v53 = vmul.f32 %v469_v1, %v990_v42  ;;  %v505_v50 = vmul.f32 %v473_v2, %v988_v41 }
  0xc7   :  { %592 = vmatprep.subr.bf16.mxu0 %v581_v14  ;;  %v560_v23 = vmax.f32 %v528_v15, 0.0  ;;  %v530_v24 = vadd.f32 %v498_v16, %v970_v17  ;;  %v503_v25 = vmul.f32 %v471_v8, %v990_v42  ;;  %v507_v26 = vmul.f32 %v475_v9, %v988_v41  ;;  %620 = vmatprep.mubr.bf16.mxu0 %v798_v0 }
  0xc8   :  { %645 = vmatprep.subr.bf16.mxu1 %v583_v56  ;;  %v558_v21 = vmax.f32 %v526_v20, 0.0  ;;  %v533_v27 = vadd.f32 %v501_v53, %v1002_v11  ;;  %v537_v19 = vadd.f32 %v505_v50, %v1000_v10  ;;  %v500_v13 = vmul.f32 %v468_v18, %v990_v42 }
  0xc9   :  { %v580_v31 = vpack.c.bf16 %v560_v23, %v556_v47  ;;  %v562_v12 = vmax.f32 %v530_v24, 0.0  ;;  %v535_v17 = vadd.f32 %v503_v25, %v1002_v11  ;;  %v539_v32 = vadd.f32 %v507_v26, %v1000_v10 }
  0xca   :  { %v565_v34 = vmax.f32 %v533_v27, 0.0  ;;  %v569_v35 = vmax.f32 %v537_v19, 0.0  ;;  %v504_v36 = vmul.f32 %v472_v52, %v988_v41  ;;  %v532_v37 = vadd.f32 %v500_v13, %v1002_v11 }
  0xcb   :  { %593 = vmatpush1.bf16.msra.mxu0 %v580_v31  ;;  %v582_v38 = vpack.c.bf16 %v562_v12, %v558_v21  ;;  %v567_v7 = vmax.f32 %v535_v17, 0.0  ;;  %v571_v39 = vmax.f32 %v539_v32, 0.0  ;;  %v502_v40 = vmul.f32 %v470_v30, %v990_v42 }
  0xcc   :  { %v585_v43 = vpack.c.bf16 %v569_v35, %v565_v34  ;;  %v536_v44 = vadd.f32 %v504_v36, %v1000_v10  ;;  %v564_v45 = vmax.f32 %v532_v37, 0.0  ;;  %v506_v29 = vmul.f32 %v474_v33, %v988_v41  ;;  %v1104_v41 = vpop.permute.xlu1 %291 }
  0xcd   :  { %646 = vmatpush1.bf16.msra.mxu1 %v582_v38  ;;  %v587_v46 = vpack.c.bf16 %v571_v39, %v567_v7  ;;  %v534_v51 = vadd.f32 %v502_v40, %v1002_v11 }
  0xce   :  { %594 = vmatprep.subr.bf16.mxu0 %v585_v43  ;;  %v568_v54 = vmax.f32 %v536_v44, 0.0  ;;  %v538_v57 = vadd.f32 %v506_v29, %v1000_v10  ;;  %v1106_v10 = vpop.permute.xlu0 %286 }
  0xcf   :  { %647 = vmatprep.subr.bf16.mxu1 %v587_v46  ;;  %v566_v28 = vmax.f32 %v534_v51, 0.0 }
  0xd0   :  { %v584_v58 = vpack.c.bf16 %v568_v54, %v564_v45  ;;  %v570_v59 = vmax.f32 %v538_v57, 0.0  ;;  %v1116_v8 = vpop.permute.xlu1 %301 }
  0xd2   :  { %595 = vmatpush1.bf16.msra.mxu0 %v584_v58  ;;  %v586_v42 = vpack.c.bf16 %v570_v59, %v566_v28  ;;  %v1118_v9 = vpop.permute.xlu0 %296 }
  0xd4   :  { %648 = vmatpush1.bf16.msra.mxu1 %v586_v42 }
  0xd5   :  { %734 = vmatmul.mubr.msk.bf16.vlgmr.msra.gmra.mrb[8].mxu0 %vm314_vm0, %v1024_v61 }
  0xd6   :  { %630 = vmatprep.mubr.bf16.mxu0 %v798_v0 }
  0xd7   :  { %736 = vmatmul.mubr.msk.bf16.vlgmr.msra.gmra.mrb[8].mxu1 %vm314_vm0, %v1024_v61 }
  0xd8   :  { %683 = vmatprep.mubr.bf16.mxu1 %v798_v0 }
  0xdd   :  { %735 = vmatmul.mubr.msk.bf16.gmra.mrb[12].mxu0 %vm314_vm0, %v1058_v6 }
  0xdf   :  { %737 = vmatmul.mubr.msk.bf16.gmra.mrb[12].mxu1 %vm314_vm0, %v1058_v6 }
 0x18f   :  { %v355_v11 = vpop.f32.mrb[0].mxu0  ;;  %v408_v60 = vpop.f32.mrb[0].mxu1 }
 0x190   :  { %v356_v49 = vadd.f32 %v355_v11, %v1106_v10  ;;  %v409_v22 = vadd.f32 %v408_v60, %v1106_v10  ;;  %v357_v62 = vpop.f32.mrb[1].mxu0  ;;  %v410_v61 = vpop.f32.mrb[1].mxu1 }
 0x191   :  { %v358_v0 = vadd.f32 %v357_v62, %v1106_v10  ;;  %v411_v63 = vadd.f32 %v410_v61, %v1106_v10  ;;  %v359_v48 = vpop.f32.mrb[2].mxu0  ;;  %v412_v1 = vpop.f32.mrb[2].mxu1 }
 0x192   :  { %427 = vst [vmem:[#allocation5] sm:$0xff] %v356_v49  ;;  %429 = vst [vmem:[#allocation5 + $0x10] sm:$0xff] %v409_v22  ;;  %v360_v6 = vadd.f32 %v359_v48, %v1104_v41  ;;  %v413_v2 = vadd.f32 %v412_v1, %v1104_v41  ;;  %v361_v3 = vpop.f32.mrb[3].mxu0  ;;  %v414_v4 = vpop.f32.mrb[3].mxu1 }
 0x193   :  { %428 = vst [vmem:[#allocation5 + $0x8] sm:$0xff] %v358_v0  ;;  %430 = vst [vmem:[#allocation5 + $0x18] sm:$0xff] %v411_v63  ;;  %v362_v55 = vadd.f32 %v361_v3, %v1104_v41  ;;  %v415_v5 = vadd.f32 %v414_v4, %v1104_v41 }
 0x194   :  { %431 = vst [vmem:[#allocation5 + $0x20] sm:$0xff] %v360_v6  ;;  %433 = vst [vmem:[#allocation5 + $0x30] sm:$0xff] %v413_v2 }
 0x195   :  { %432 = vst [vmem:[#allocation5 + $0x28] sm:$0xff] %v362_v55  ;;  %434 = vst [vmem:[#allocation5 + $0x38] sm:$0xff] %v415_v5 }
 0x197   :  { %v418_v14 = vpop.f32.mrb[4].mxu1 }
 0x198   :  { %v365_v15 = vpop.f32.mrb[4].mxu0  ;;  %v419_v47 = vadd.f32 %v418_v14, %v1118_v9  ;;  %v420_v16 = vpop.f32.mrb[5].mxu1 }
 0x199   :  { %v366_v18 = vadd.f32 %v365_v15, %v1118_v9  ;;  %v367_v56 = vpop.f32.mrb[5].mxu0  ;;  %v421_v20 = vadd.f32 %v420_v16, %v1118_v9  ;;  %v422_v53 = vpop.f32.mrb[6].mxu1 }
 0x19a   :  { %437 = vst [vmem:[#allocation5 + $0x50] sm:$0xff] %v419_v47  ;;  %v368_v50 = vadd.f32 %v367_v56, %v1118_v9  ;;  %v369_v23 = vpop.f32.mrb[6].mxu0  ;;  %v423_v24 = vadd.f32 %v422_v53, %v1116_v8  ;;  %v424_v25 = vpop.f32.mrb[7].mxu1 }
 0x19b   :  { %435 = vst [vmem:[#allocation5 + $0x40] sm:$0xff] %v366_v18  ;;  %438 = vst [vmem:[#allocation5 + $0x58] sm:$0xff] %v421_v20  ;;  %v370_v26 = vadd.f32 %v369_v23, %v1116_v8  ;;  %v371_v52 = vpop.f32.mrb[7].mxu0  ;;  %v425_v21 = vadd.f32 %v424_v25, %v1116_v8 }
 0x19c   :  { %436 = vst [vmem:[#allocation5 + $0x48] sm:$0xff] %v368_v50  ;;  %441 = vst [vmem:[#allocation5 + $0x70] sm:$0xff] %v423_v24  ;;  %v372_v27 = vadd.f32 %v371_v52, %v1116_v8 }
 0x19d   :  { %439 = vst [vmem:[#allocation5 + $0x60] sm:$0xff] %v370_v26  ;;  %442 = vst [vmem:[#allocation5 + $0x78] sm:$0xff] %v425_v21 }
 0x19e   :  { %440 = vst [vmem:[#allocation5 + $0x68] sm:$0xff] %v372_v27 }
 0x1a8   :  { %v622_v19 = vpop.f32.mrb[8].mxu0 }
 0x1a9   :  { %v623_v13 = vadd.f32 %v622_v19, %v1106_v10  ;;  %v624_v30 = vpop.f32.mrb[9].mxu0 }
 0x1aa   :  { %v675_v31 = vpop.f32.mrb[8].mxu1  ;;  %v625_v12 = vadd.f32 %v624_v30, %v1106_v10  ;;  %v626_v17 = vpop.f32.mrb[10].mxu0 }
 0x1ab   :  { %695 = vst [vmem:[#allocation5 + $0x80] sm:$0xff] %v623_v13  ;;  %v676_v32 = vadd.f32 %v675_v31, %v1106_v10  ;;  %v677_v33 = vpop.f32.mrb[9].mxu1  ;;  %v627_v34 = vadd.f32 %v626_v17, %v1104_v41  ;;  %v628_v35 = vpop.f32.mrb[11].mxu0 }
 0x1ac   :  { %696 = vst [vmem:[#allocation5 + $0x88] sm:$0xff] %v625_v12  ;;  %v678_v36 = vadd.f32 %v677_v33, %v1106_v10  ;;  %v679_v37 = vpop.f32.mrb[10].mxu1  ;;  %v629_v38 = vadd.f32 %v628_v35, %v1104_v41 }
 0x1ad   :  { %697 = vst [vmem:[#allocation5 + $0x90] sm:$0xff] %v676_v32  ;;  %699 = vst [vmem:[#allocation5 + $0xa0] sm:$0xff] %v627_v34  ;;  %v680_v7 = vadd.f32 %v679_v37, %v1104_v41  ;;  %v681_v39 = vpop.f32.mrb[11].mxu1 }
 0x1ae   :  { %698 = vst [vmem:[#allocation5 + $0x98] sm:$0xff] %v678_v36  ;;  %700 = vst [vmem:[#allocation5 + $0xa8] sm:$0xff] %v629_v38  ;;  %v682_v40 = vadd.f32 %v681_v39, %v1104_v41 }
 0x1af   :  { %701 = vst [vmem:[#allocation5 + $0xb0] sm:$0xff] %v680_v7 }
 0x1b0   :  { %702 = vst [vmem:[#allocation5 + $0xb8] sm:$0xff] %v682_v40  ;;  %v632_v43 = vpop.f32.mrb[12].mxu0 }
 0x1b1   :  { %v633_v44 = vadd.f32 %v632_v43, %v1118_v9  ;;  %v634_v45 = vpop.f32.mrb[13].mxu0 }
 0x1b2   :  { %v685_v29 = vpop.f32.mrb[12].mxu1  ;;  %v635_v46 = vadd.f32 %v634_v45, %v1118_v9  ;;  %v636_v51 = vpop.f32.mrb[14].mxu0 }
 0x1b3   :  { %703 = vst [vmem:[#allocation5 + $0xc0] sm:$0xff] %v633_v44  ;;  %v686_v54 = vadd.f32 %v685_v29, %v1118_v9  ;;  %v687_v57 = vpop.f32.mrb[13].mxu1  ;;  %v637_v28 = vadd.f32 %v636_v51, %v1116_v8  ;;  %v638_v58 = vpop.f32.mrb[15].mxu0 }
 0x1b4   :  { %704 = vst [vmem:[#allocation5 + $0xc8] sm:$0xff] %v635_v46  ;;  %v688_v59 = vadd.f32 %v687_v57, %v1118_v9  ;;  %v689_v42 = vpop.f32.mrb[14].mxu1  ;;  %v639_v41 = vadd.f32 %v638_v58, %v1116_v8 }
 0x1b5   :  { %705 = vst [vmem:[#allocation5 + $0xd0] sm:$0xff] %v686_v54  ;;  %707 = vst [vmem:[#allocation5 + $0xe0] sm:$0xff] %v637_v28  ;;  %v690_v10 = vadd.f32 %v689_v42, %v1116_v8  ;;  %v691_v11 = vpop.f32.mrb[15].mxu1 }
 0x1b6   :  { %706 = vst [vmem:[#allocation5 + $0xd8] sm:$0xff] %v688_v59  ;;  %708 = vst [vmem:[#allocation5 + $0xe8] sm:$0xff] %v639_v41  ;;  %v692_v60 = vadd.f32 %v691_v11, %v1116_v8 }
 0x1b7   :  { %709 = vst [vmem:[#allocation5 + $0xf0] sm:$0xff] %v690_v10 }
 0x1b8   :  { %710 = vst [vmem:[#allocation5 + $0xf8] sm:$0xff] %v692_v60 }
 0x1b9   :  { %780 = shalt.err (!%p777_p12)
}
 0x1ba   :  { %s781_s27 = scalar_lea.hbm %s1164_s5, 4096 }
 0x1bb   :  { %p782_p13 = scmp.ne.s32.totalorder %s1164_s5, %s781_s27  ;;  %p785_p0 = scmp.lt.u32.totalorder %s781_s27, %s1164_s5 }
 0x1bd   :  { %p787_p1 = pnand %p785_p0, %p782_p13 }
 0x1bf   :  { %790 = shalt.err (!%p787_p1)
}
 0x1c0   :  { %722 = dma.vmem_to_hbm [thread:$0]  %s717_s23, 4096, %s1164_s5, [#allocation4], %s796_s28, %s796_s28, %s797_s29  }
 0x1c1   :  { %793 = dma.done.wait [#allocation4], 4096  }
 0x1c2   :  { %794 = vsyncadd [#allocation4], 4294963200 }
 0x1c3   :  { %726 = vsyncpa [#allocation3], 1 }
 0x1c4   :  { %727 = vsyncpa [#allocation4], 1 }

</bundles_post_ra>
